<compile_context>
chip_gen: v5e
topology: v5e:2x2
jax: 0.10.0
libtpu: 0.0.40
codegen_flags: <defaults>
</compile_context>

<pallas_src>
import math

import jax
import jax.numpy as jnp
from jax import lax
from jax.experimental import pallas as pl
from jax.experimental.pallas import tpu as pltpu


_VMEM_LIMIT_BYTES = 32 * 1024 * 1024       # <= default scoped on v6e/v7x, < physical on v5e/v7x
_TILE_VMEM_BUDGET = 12 * 1024 * 1024       # budget for table (x2) + output tile (x2) buffers
_VMEM_TABLE_BYTES_MAX = 4 * 1024 * 1024    # small-table (in-VMEM) fast-path threshold


def _round_up(x: int, m: int) -> int:
    return ((x + m - 1) // m) * m


def _choose_tile(n_tok: int, emb_dim: int, itemsize: int, table_in_vmem_bytes: int) -> int:
    """Pick a token-tile size T (multiple of the sublane packing factor)."""
    # Sublane packing factor: 8 rows (f32), 16 (bf16), 32 (int8).
    align = max(8, 32 // itemsize)
    row_bytes = emb_dim * itemsize
    # Output tile is double-buffered; table (fast path) is counted twice as well.
    budget = max(_TILE_VMEM_BUDGET - 2 * table_in_vmem_bytes, 2 * align * row_bytes)
    t_max = max(align, budget // (2 * row_bytes))
    t_max = min(t_max, 2048)                       # big enough to amortize ~0.35us/grid-step
    t_max = max(align, (t_max // align) * align)
    t_cap = min(t_max, _round_up(n_tok, align))
    t_cap = max(align, (t_cap // align) * align)
    # Prefer a tile that divides n_tok exactly (no padded tail, no output re-slice),
    # but don't shrink below half of the cap just to avoid padding.
    lo = max(t_cap // 2, align)
    for t in range(t_cap, lo - 1, -align):
        if n_tok % t == 0:
            return t
    return t_cap


def _make_gather_kernel(tokens_per_block: int, depth: int, steady_unroll: int):
    T = tokens_per_block

    def kernel(idx_ref, w_ref, o_ref, sem):
        # idx_ref: (n_pad,) int32 in SMEM (scalar prefetch) -- all token ids
        # w_ref:   (V, D) weight table -- HBM ref (pl.ANY) or full-array VMEM block
        # o_ref:   (T, D) output tile in VMEM; rows are DMA'd straight into it
        # sem:     (depth,) DMA semaphores, slot-rotated
        base = pl.program_id(0) * T

        def start_row(j, row):
            pltpu.make_async_copy(
                w_ref.at[row], o_ref.at[j], sem.at[j % depth]
            ).start()

        def wait_row(j):
            # Only the destination shape / semaphore matter for wait(); use row 0
            # as a same-shaped dummy source.
            pltpu.make_async_copy(
                w_ref.at[0], o_ref.at[j], sem.at[j % depth]
            ).wait()

        # Prime the pipeline with `depth` in-flight row fetches (static unroll).
        for j in range(depth):
            start_row(j, idx_ref[base + j])

        # Steady state: read the NEXT row id from SMEM before the wait (waits
        # break SMEM sst->sld forwarding), retire row j, refill its slot.
        if T > depth:
            def body(j, carry):
                nxt = idx_ref[base + j + depth]
                wait_row(j)
                start_row(j + depth, nxt)
                return carry

            lax.fori_loop(0, T - depth, body, 0,
                          unroll=min(steady_unroll, T - depth))

        # Drain the remaining in-flight fetches (static unroll).
        for j in range(T - depth, T):
            wait_row(j)

    return kernel


def embedding_forward(x, weight, *, dma_depth: int = 16, steady_unroll: int = 8,
                      force_hbm_table: bool = False):
    """x: integer indices of any shape; weight: (V, D). Returns x.shape + (D,)."""
    V, D = weight.shape
    idx_shape = x.shape
    n_tok = int(math.prod(idx_shape))

    itemsize = jnp.dtype(weight.dtype).itemsize
    table_bytes = V * D * itemsize
    use_vmem_table = (table_bytes <= _VMEM_TABLE_BYTES_MAX) and not force_hbm_table

    T = _choose_tile(n_tok, D, itemsize, table_bytes if use_vmem_table else 0)
    n_blocks = pl.cdiv(n_tok, T)
    n_pad = n_blocks * T

    idx = x.reshape(-1).astype(jnp.int32)
    if n_pad != n_tok:
        # Padded tail tokens gather row 0; they are sliced off below.
        idx = jnp.pad(idx, (0, n_pad - n_tok))

    depth = max(1, min(dma_depth, T))
    kernel = _make_gather_kernel(T, depth, steady_unroll)

    if use_vmem_table:
        # Fast path: whole table lives in VMEM (constant block index => fetched
        # from HBM once); per-row copies are local VMEM->VMEM DMAs.
        w_spec = pl.BlockSpec((V, D), lambda t, idx_ref: (0, 0))
    else:
        # Large table: leave it in HBM, gather rows with per-row HBM DMAs.
        w_spec = pl.BlockSpec(memory_space=pl.ANY)

    out_flat = pl.pallas_call(
        kernel,
        out_shape=jax.ShapeDtypeStruct((n_pad, D), weight.dtype),
        grid_spec=pltpu.PrefetchScalarGridSpec(
            num_scalar_prefetch=1,                           # indices -> SMEM
            grid=(n_blocks,),
            in_specs=[w_spec],
            out_specs=pl.BlockSpec((T, D), lambda t, idx_ref: (t, 0)),
            scratch_shapes=[pltpu.SemaphoreType.DMA((depth,))],
        ),
        compiler_params=pltpu.CompilerParams(
            dimension_semantics=("parallel",),               # tiles are independent
            vmem_limit_bytes=_VMEM_LIMIT_BYTES,
        ),
    )(idx, weight)

    if n_pad != n_tok:
        out_flat = out_flat[:n_tok]
    return out_flat.reshape(*idx_shape, D)


class EmbeddingPallas:
    """Mirror of the PyTorch Embedding module (normal init with given std)."""

    def __init__(self, num_embeddings: int, embedding_dim: int, std: float = 1.0,
                 key=None):
        if key is None:
            key = jax.random.PRNGKey(0)
        # init.normal_(weight, std=std)
        self.weight = std * jax.random.normal(
            key, (num_embeddings, embedding_dim), dtype=jnp.float32)

    def __call__(self, x):
        return embedding_forward(x, self.weight)


if __name__ == "__main__":
    num_embeddings = 64
    embedding_dim = 128
    B, S = 2, 8

    root = jax.random.PRNGKey(0)
    k_w, k_x, k_x2 = jax.random.split(root, 3)

    emb = EmbeddingPallas(num_embeddings, embedding_dim, std=1.0, key=k_w)

    # --- 1) main path: small table in VMEM, T divides B*S (no padding) ---
    x = jax.random.randint(k_x, (B, S), 0, num_embeddings, dtype=jnp.int32)
    out = jax.block_until_ready(emb(x))
    ref = jnp.take(emb.weight, x, axis=0)
    assert out.shape == (B, S, embedding_dim)
    assert jnp.allclose(out, ref), "mismatch vs. reference (VMEM-table path)"

    # --- 2) ragged token count: exercises the padded-tail path ---
    x_ragged = jax.random.randint(k_x2, (3, 5), 0, num_embeddings, dtype=jnp.int32)
    out_r = jax.block_until_ready(embedding_forward(x_ragged, emb.weight))
    ref_r = jnp.take(emb.weight, x_ragged, axis=0)
    assert out_r.shape == (3, 5, embedding_dim)
    assert jnp.allclose(out_r, ref_r), "mismatch vs. reference (padded-tail path)"

    # --- 3) force the large-table path (weight stays in HBM, per-row HBM DMAs) ---
    out_h = jax.block_until_ready(
        embedding_forward(x, emb.weight, force_hbm_table=True))
    assert jnp.allclose(out_h, ref), "mismatch vs. reference (HBM-table path)"

    print("KERNEL_OK")
</pallas_src>

<mosaic_0001>
module attributes {stable_mosaic.version = 11 : i64} {
  func.func @kernel(%arg0: i32, %arg1: memref<16xi32, #tpu.memory_space<smem>>, %arg2: memref<64x128xf32, #tpu.memory_space<vmem>>, %arg3: memref<16x128xf32, #tpu.memory_space<vmem>>, %arg4: memref<16x!tpu.dma_semaphore, #tpu.memory_space<semaphore_mem>>) attributes {dimension_semantics = [#tpu.dimension_semantics<parallel>], iteration_bounds = array<i64: 1>, scalar_prefetch = 1 : i64, scratch_operands = 1 : i64, tpu.core_type = #tpu.core_type<tc>, window_params = [{pipeline_mode = #tpu.pipeline_mode<synchronous>, transform_indices = @transform_0, window_bounds = array<i64: 64, 128>}, {transform_indices = @transform_1, window_bounds = array<i64: 16, 128>}]} {
    %c16_i32 = arith.constant 16 : i32
    %0 = arith.muli %arg0, %c16_i32 : i32
    %c0_i32 = arith.constant 0 : i32
    %1 = arith.addi %0, %c0_i32 : i32
    %2 = arith.index_cast %1 : i32 to index
    %3 = memref.load %arg1[%2] : memref<16xi32, #tpu.memory_space<smem>>
    %c0_i32_0 = arith.constant 0 : i32
    %c0_i32_1 = arith.constant 0 : i32
    %c0_i32_2 = arith.constant 0 : i32
    %4 = tpu.memref_slice %arg2[%3, %c0_i32_2] : memref<64x128xf32, #tpu.memory_space<vmem>> -> memref<1x128xf32, #tpu.memory_space<vmem>>
    %5 = tpu.memref_squeeze %4 : memref<1x128xf32, #tpu.memory_space<vmem>> -> memref<128xf32, #tpu.memory_space<vmem>>
    %c0_i32_3 = arith.constant 0 : i32
    %6 = tpu.memref_slice %arg3[%c0_i32_0, %c0_i32_3] : memref<16x128xf32, #tpu.memory_space<vmem>> -> memref<1x128xf32, #tpu.memory_space<vmem>>
    %7 = tpu.memref_squeeze %6 : memref<1x128xf32, #tpu.memory_space<vmem>> -> memref<128xf32, #tpu.memory_space<vmem>>
    %8 = tpu.memref_slice %arg4[%c0_i32_1] : memref<16x!tpu.dma_semaphore, #tpu.memory_space<semaphore_mem>> -> memref<1x!tpu.dma_semaphore, #tpu.memory_space<semaphore_mem>>
    %9 = tpu.memref_squeeze %8 : memref<1x!tpu.dma_semaphore, #tpu.memory_space<semaphore_mem>> -> memref<!tpu.dma_semaphore, #tpu.memory_space<semaphore_mem>>
    tpu.enqueue_dma source(%5 : memref<128xf32, #tpu.memory_space<vmem>>) target(%7 : memref<128xf32, #tpu.memory_space<vmem>>) target_semaphore(%9 : memref<!tpu.dma_semaphore, #tpu.memory_space<semaphore_mem>>)
    %c1_i32 = arith.constant 1 : i32
    %10 = arith.addi %0, %c1_i32 : i32
    %11 = arith.index_cast %10 : i32 to index
    %12 = memref.load %arg1[%11] : memref<16xi32, #tpu.memory_space<smem>>
    %c1_i32_4 = arith.constant 1 : i32
    %c1_i32_5 = arith.constant 1 : i32
    %c0_i32_6 = arith.constant 0 : i32
    %13 = tpu.memref_slice %arg2[%12, %c0_i32_6] : memref<64x128xf32, #tpu.memory_space<vmem>> -> memref<1x128xf32, #tpu.memory_space<vmem>>
    %14 = tpu.memref_squeeze %13 : memref<1x128xf32, #tpu.memory_space<vmem>> -> memref<128xf32, #tpu.memory_space<vmem>>
    %c0_i32_7 = arith.constant 0 : i32
    %15 = tpu.memref_slice %arg3[%c1_i32_4, %c0_i32_7] : memref<16x128xf32, #tpu.memory_space<vmem>> -> memref<1x128xf32, #tpu.memory_space<vmem>>
    %16 = tpu.memref_squeeze %15 : memref<1x128xf32, #tpu.memory_space<vmem>> -> memref<128xf32, #tpu.memory_space<vmem>>
    %17 = tpu.memref_slice %arg4[%c1_i32_5] : memref<16x!tpu.dma_semaphore, #tpu.memory_space<semaphore_mem>> -> memref<1x!tpu.dma_semaphore, #tpu.memory_space<semaphore_mem>>
    %18 = tpu.memref_squeeze %17 : memref<1x!tpu.dma_semaphore, #tpu.memory_space<semaphore_mem>> -> memref<!tpu.dma_semaphore, #tpu.memory_space<semaphore_mem>>
    tpu.enqueue_dma source(%14 : memref<128xf32, #tpu.memory_space<vmem>>) target(%16 : memref<128xf32, #tpu.memory_space<vmem>>) target_semaphore(%18 : memref<!tpu.dma_semaphore, #tpu.memory_space<semaphore_mem>>)
    %c2_i32 = arith.constant 2 : i32
    %19 = arith.addi %0, %c2_i32 : i32
    %20 = arith.index_cast %19 : i32 to index
    %21 = memref.load %arg1[%20] : memref<16xi32, #tpu.memory_space<smem>>
    %c2_i32_8 = arith.constant 2 : i32
    %c2_i32_9 = arith.constant 2 : i32
    %c0_i32_10 = arith.constant 0 : i32
    %22 = tpu.memref_slice %arg2[%21, %c0_i32_10] : memref<64x128xf32, #tpu.memory_space<vmem>> -> memref<1x128xf32, #tpu.memory_space<vmem>>
    %23 = tpu.memref_squeeze %22 : memref<1x128xf32, #tpu.memory_space<vmem>> -> memref<128xf32, #tpu.memory_space<vmem>>
    %c0_i32_11 = arith.constant 0 : i32
    %24 = tpu.memref_slice %arg3[%c2_i32_8, %c0_i32_11] : memref<16x128xf32, #tpu.memory_space<vmem>> -> memref<1x128xf32, #tpu.memory_space<vmem>>
    %25 = tpu.memref_squeeze %24 : memref<1x128xf32, #tpu.memory_space<vmem>> -> memref<128xf32, #tpu.memory_space<vmem>>
    %26 = tpu.memref_slice %arg4[%c2_i32_9] : memref<16x!tpu.dma_semaphore, #tpu.memory_space<semaphore_mem>> -> memref<1x!tpu.dma_semaphore, #tpu.memory_space<semaphore_mem>>
    %27 = tpu.memref_squeeze %26 : memref<1x!tpu.dma_semaphore, #tpu.memory_space<semaphore_mem>> -> memref<!tpu.dma_semaphore, #tpu.memory_space<semaphore_mem>>
    tpu.enqueue_dma source(%23 : memref<128xf32, #tpu.memory_space<vmem>>) target(%25 : memref<128xf32, #tpu.memory_space<vmem>>) target_semaphore(%27 : memref<!tpu.dma_semaphore, #tpu.memory_space<semaphore_mem>>)
    %c3_i32 = arith.constant 3 : i32
    %28 = arith.addi %0, %c3_i32 : i32
    %29 = arith.index_cast %28 : i32 to index
    %30 = memref.load %arg1[%29] : memref<16xi32, #tpu.memory_space<smem>>
    %c3_i32_12 = arith.constant 3 : i32
    %c3_i32_13 = arith.constant 3 : i32
    %c0_i32_14 = arith.constant 0 : i32
    %31 = tpu.memref_slice %arg2[%30, %c0_i32_14] : memref<64x128xf32, #tpu.memory_space<vmem>> -> memref<1x128xf32, #tpu.memory_space<vmem>>
    %32 = tpu.memref_squeeze %31 : memref<1x128xf32, #tpu.memory_space<vmem>> -> memref<128xf32, #tpu.memory_space<vmem>>
    %c0_i32_15 = arith.constant 0 : i32
    %33 = tpu.memref_slice %arg3[%c3_i32_12, %c0_i32_15] : memref<16x128xf32, #tpu.memory_space<vmem>> -> memref<1x128xf32, #tpu.memory_space<vmem>>
    %34 = tpu.memref_squeeze %33 : memref<1x128xf32, #tpu.memory_space<vmem>> -> memref<128xf32, #tpu.memory_space<vmem>>
    %35 = tpu.memref_slice %arg4[%c3_i32_13] : memref<16x!tpu.dma_semaphore, #tpu.memory_space<semaphore_mem>> -> memref<1x!tpu.dma_semaphore, #tpu.memory_space<semaphore_mem>>
    %36 = tpu.memref_squeeze %35 : memref<1x!tpu.dma_semaphore, #tpu.memory_space<semaphore_mem>> -> memref<!tpu.dma_semaphore, #tpu.memory_space<semaphore_mem>>
    tpu.enqueue_dma source(%32 : memref<128xf32, #tpu.memory_space<vmem>>) target(%34 : memref<128xf32, #tpu.memory_space<vmem>>) target_semaphore(%36 : memref<!tpu.dma_semaphore, #tpu.memory_space<semaphore_mem>>)
    %c4_i32 = arith.constant 4 : i32
    %37 = arith.addi %0, %c4_i32 : i32
    %38 = arith.index_cast %37 : i32 to index
    %39 = memref.load %arg1[%38] : memref<16xi32, #tpu.memory_space<smem>>
    %c4_i32_16 = arith.constant 4 : i32
    %c4_i32_17 = arith.constant 4 : i32
    %c0_i32_18 = arith.constant 0 : i32
    %40 = tpu.memref_slice %arg2[%39, %c0_i32_18] : memref<64x128xf32, #tpu.memory_space<vmem>> -> memref<1x128xf32, #tpu.memory_space<vmem>>
    %41 = tpu.memref_squeeze %40 : memref<1x128xf32, #tpu.memory_space<vmem>> -> memref<128xf32, #tpu.memory_space<vmem>>
    %c0_i32_19 = arith.constant 0 : i32
    %42 = tpu.memref_slice %arg3[%c4_i32_16, %c0_i32_19] : memref<16x128xf32, #tpu.memory_space<vmem>> -> memref<1x128xf32, #tpu.memory_space<vmem>>
    %43 = tpu.memref_squeeze %42 : memref<1x128xf32, #tpu.memory_space<vmem>> -> memref<128xf32, #tpu.memory_space<vmem>>
    %44 = tpu.memref_slice %arg4[%c4_i32_17] : memref<16x!tpu.dma_semaphore, #tpu.memory_space<semaphore_mem>> -> memref<1x!tpu.dma_semaphore, #tpu.memory_space<semaphore_mem>>
    %45 = tpu.memref_squeeze %44 : memref<1x!tpu.dma_semaphore, #tpu.memory_space<semaphore_mem>> -> memref<!tpu.dma_semaphore, #tpu.memory_space<semaphore_mem>>
    tpu.enqueue_dma source(%41 : memref<128xf32, #tpu.memory_space<vmem>>) target(%43 : memref<128xf32, #tpu.memory_space<vmem>>) target_semaphore(%45 : memref<!tpu.dma_semaphore, #tpu.memory_space<semaphore_mem>>)
    %c5_i32 = arith.constant 5 : i32
    %46 = arith.addi %0, %c5_i32 : i32
    %47 = arith.index_cast %46 : i32 to index
    %48 = memref.load %arg1[%47] : memref<16xi32, #tpu.memory_space<smem>>
    %c5_i32_20 = arith.constant 5 : i32
    %c5_i32_21 = arith.constant 5 : i32
    %c0_i32_22 = arith.constant 0 : i32
    %49 = tpu.memref_slice %arg2[%48, %c0_i32_22] : memref<64x128xf32, #tpu.memory_space<vmem>> -> memref<1x128xf32, #tpu.memory_space<vmem>>
    %50 = tpu.memref_squeeze %49 : memref<1x128xf32, #tpu.memory_space<vmem>> -> memref<128xf32, #tpu.memory_space<vmem>>
    %c0_i32_23 = arith.constant 0 : i32
    %51 = tpu.memref_slice %arg3[%c5_i32_20, %c0_i32_23] : memref<16x128xf32, #tpu.memory_space<vmem>> -> memref<1x128xf32, #tpu.memory_space<vmem>>
    %52 = tpu.memref_squeeze %51 : memref<1x128xf32, #tpu.memory_space<vmem>> -> memref<128xf32, #tpu.memory_space<vmem>>
    %53 = tpu.memref_slice %arg4[%c5_i32_21] : memref<16x!tpu.dma_semaphore, #tpu.memory_space<semaphore_mem>> -> memref<1x!tpu.dma_semaphore, #tpu.memory_space<semaphore_mem>>
    %54 = tpu.memref_squeeze %53 : memref<1x!tpu.dma_semaphore, #tpu.memory_space<semaphore_mem>> -> memref<!tpu.dma_semaphore, #tpu.memory_space<semaphore_mem>>
    tpu.enqueue_dma source(%50 : memref<128xf32, #tpu.memory_space<vmem>>) target(%52 : memref<128xf32, #tpu.memory_space<vmem>>) target_semaphore(%54 : memref<!tpu.dma_semaphore, #tpu.memory_space<semaphore_mem>>)
    %c6_i32 = arith.constant 6 : i32
    %55 = arith.addi %0, %c6_i32 : i32
    %56 = arith.index_cast %55 : i32 to index
    %57 = memref.load %arg1[%56] : memref<16xi32, #tpu.memory_space<smem>>
    %c6_i32_24 = arith.constant 6 : i32
    %c6_i32_25 = arith.constant 6 : i32
    %c0_i32_26 = arith.constant 0 : i32
    %58 = tpu.memref_slice %arg2[%57, %c0_i32_26] : memref<64x128xf32, #tpu.memory_space<vmem>> -> memref<1x128xf32, #tpu.memory_space<vmem>>
    %59 = tpu.memref_squeeze %58 : memref<1x128xf32, #tpu.memory_space<vmem>> -> memref<128xf32, #tpu.memory_space<vmem>>
    %c0_i32_27 = arith.constant 0 : i32
    %60 = tpu.memref_slice %arg3[%c6_i32_24, %c0_i32_27] : memref<16x128xf32, #tpu.memory_space<vmem>> -> memref<1x128xf32, #tpu.memory_space<vmem>>
    %61 = tpu.memref_squeeze %60 : memref<1x128xf32, #tpu.memory_space<vmem>> -> memref<128xf32, #tpu.memory_space<vmem>>
    %62 = tpu.memref_slice %arg4[%c6_i32_25] : memref<16x!tpu.dma_semaphore, #tpu.memory_space<semaphore_mem>> -> memref<1x!tpu.dma_semaphore, #tpu.memory_space<semaphore_mem>>
    %63 = tpu.memref_squeeze %62 : memref<1x!tpu.dma_semaphore, #tpu.memory_space<semaphore_mem>> -> memref<!tpu.dma_semaphore, #tpu.memory_space<semaphore_mem>>
    tpu.enqueue_dma source(%59 : memref<128xf32, #tpu.memory_space<vmem>>) target(%61 : memref<128xf32, #tpu.memory_space<vmem>>) target_semaphore(%63 : memref<!tpu.dma_semaphore, #tpu.memory_space<semaphore_mem>>)
    %c7_i32 = arith.constant 7 : i32
    %64 = arith.addi %0, %c7_i32 : i32
    %65 = arith.index_cast %64 : i32 to index
    %66 = memref.load %arg1[%65] : memref<16xi32, #tpu.memory_space<smem>>
    %c7_i32_28 = arith.constant 7 : i32
    %c7_i32_29 = arith.constant 7 : i32
    %c0_i32_30 = arith.constant 0 : i32
    %67 = tpu.memref_slice %arg2[%66, %c0_i32_30] : memref<64x128xf32, #tpu.memory_space<vmem>> -> memref<1x128xf32, #tpu.memory_space<vmem>>
    %68 = tpu.memref_squeeze %67 : memref<1x128xf32, #tpu.memory_space<vmem>> -> memref<128xf32, #tpu.memory_space<vmem>>
    %c0_i32_31 = arith.constant 0 : i32
    %69 = tpu.memref_slice %arg3[%c7_i32_28, %c0_i32_31] : memref<16x128xf32, #tpu.memory_space<vmem>> -> memref<1x128xf32, #tpu.memory_space<vmem>>
    %70 = tpu.memref_squeeze %69 : memref<1x128xf32, #tpu.memory_space<vmem>> -> memref<128xf32, #tpu.memory_space<vmem>>
    %71 = tpu.memref_slice %arg4[%c7_i32_29] : memref<16x!tpu.dma_semaphore, #tpu.memory_space<semaphore_mem>> -> memref<1x!tpu.dma_semaphore, #tpu.memory_space<semaphore_mem>>
    %72 = tpu.memref_squeeze %71 : memref<1x!tpu.dma_semaphore, #tpu.memory_space<semaphore_mem>> -> memref<!tpu.dma_semaphore, #tpu.memory_space<semaphore_mem>>
    tpu.enqueue_dma source(%68 : memref<128xf32, #tpu.memory_space<vmem>>) target(%70 : memref<128xf32, #tpu.memory_space<vmem>>) target_semaphore(%72 : memref<!tpu.dma_semaphore, #tpu.memory_space<semaphore_mem>>)
    %c8_i32 = arith.constant 8 : i32
    %73 = arith.addi %0, %c8_i32 : i32
    %74 = arith.index_cast %73 : i32 to index
    %75 = memref.load %arg1[%74] : memref<16xi32, #tpu.memory_space<smem>>
    %c8_i32_32 = arith.constant 8 : i32
    %c8_i32_33 = arith.constant 8 : i32
    %c0_i32_34 = arith.constant 0 : i32
    %76 = tpu.memref_slice %arg2[%75, %c0_i32_34] : memref<64x128xf32, #tpu.memory_space<vmem>> -> memref<1x128xf32, #tpu.memory_space<vmem>>
    %77 = tpu.memref_squeeze %76 : memref<1x128xf32, #tpu.memory_space<vmem>> -> memref<128xf32, #tpu.memory_space<vmem>>
    %c0_i32_35 = arith.constant 0 : i32
    %78 = tpu.memref_slice %arg3[%c8_i32_32, %c0_i32_35] : memref<16x128xf32, #tpu.memory_space<vmem>> -> memref<1x128xf32, #tpu.memory_space<vmem>>
    %79 = tpu.memref_squeeze %78 : memref<1x128xf32, #tpu.memory_space<vmem>> -> memref<128xf32, #tpu.memory_space<vmem>>
    %80 = tpu.memref_slice %arg4[%c8_i32_33] : memref<16x!tpu.dma_semaphore, #tpu.memory_space<semaphore_mem>> -> memref<1x!tpu.dma_semaphore, #tpu.memory_space<semaphore_mem>>
    %81 = tpu.memref_squeeze %80 : memref<1x!tpu.dma_semaphore, #tpu.memory_space<semaphore_mem>> -> memref<!tpu.dma_semaphore, #tpu.memory_space<semaphore_mem>>
    tpu.enqueue_dma source(%77 : memref<128xf32, #tpu.memory_space<vmem>>) target(%79 : memref<128xf32, #tpu.memory_space<vmem>>) target_semaphore(%81 : memref<!tpu.dma_semaphore, #tpu.memory_space<semaphore_mem>>)
    %c9_i32 = arith.constant 9 : i32
    %82 = arith.addi %0, %c9_i32 : i32
    %83 = arith.index_cast %82 : i32 to index
    %84 = memref.load %arg1[%83] : memref<16xi32, #tpu.memory_space<smem>>
    %c9_i32_36 = arith.constant 9 : i32
    %c9_i32_37 = arith.constant 9 : i32
    %c0_i32_38 = arith.constant 0 : i32
    %85 = tpu.memref_slice %arg2[%84, %c0_i32_38] : memref<64x128xf32, #tpu.memory_space<vmem>> -> memref<1x128xf32, #tpu.memory_space<vmem>>
    %86 = tpu.memref_squeeze %85 : memref<1x128xf32, #tpu.memory_space<vmem>> -> memref<128xf32, #tpu.memory_space<vmem>>
    %c0_i32_39 = arith.constant 0 : i32
    %87 = tpu.memref_slice %arg3[%c9_i32_36, %c0_i32_39] : memref<16x128xf32, #tpu.memory_space<vmem>> -> memref<1x128xf32, #tpu.memory_space<vmem>>
    %88 = tpu.memref_squeeze %87 : memref<1x128xf32, #tpu.memory_space<vmem>> -> memref<128xf32, #tpu.memory_space<vmem>>
    %89 = tpu.memref_slice %arg4[%c9_i32_37] : memref<16x!tpu.dma_semaphore, #tpu.memory_space<semaphore_mem>> -> memref<1x!tpu.dma_semaphore, #tpu.memory_space<semaphore_mem>>
    %90 = tpu.memref_squeeze %89 : memref<1x!tpu.dma_semaphore, #tpu.memory_space<semaphore_mem>> -> memref<!tpu.dma_semaphore, #tpu.memory_space<semaphore_mem>>
    tpu.enqueue_dma source(%86 : memref<128xf32, #tpu.memory_space<vmem>>) target(%88 : memref<128xf32, #tpu.memory_space<vmem>>) target_semaphore(%90 : memref<!tpu.dma_semaphore, #tpu.memory_space<semaphore_mem>>)
    %c10_i32 = arith.constant 10 : i32
    %91 = arith.addi %0, %c10_i32 : i32
    %92 = arith.index_cast %91 : i32 to index
    %93 = memref.load %arg1[%92] : memref<16xi32, #tpu.memory_space<smem>>
    %c10_i32_40 = arith.constant 10 : i32
    %c10_i32_41 = arith.constant 10 : i32
    %c0_i32_42 = arith.constant 0 : i32
    %94 = tpu.memref_slice %arg2[%93, %c0_i32_42] : memref<64x128xf32, #tpu.memory_space<vmem>> -> memref<1x128xf32, #tpu.memory_space<vmem>>
    %95 = tpu.memref_squeeze %94 : memref<1x128xf32, #tpu.memory_space<vmem>> -> memref<128xf32, #tpu.memory_space<vmem>>
    %c0_i32_43 = arith.constant 0 : i32
    %96 = tpu.memref_slice %arg3[%c10_i32_40, %c0_i32_43] : memref<16x128xf32, #tpu.memory_space<vmem>> -> memref<1x128xf32, #tpu.memory_space<vmem>>
    %97 = tpu.memref_squeeze %96 : memref<1x128xf32, #tpu.memory_space<vmem>> -> memref<128xf32, #tpu.memory_space<vmem>>
    %98 = tpu.memref_slice %arg4[%c10_i32_41] : memref<16x!tpu.dma_semaphore, #tpu.memory_space<semaphore_mem>> -> memref<1x!tpu.dma_semaphore, #tpu.memory_space<semaphore_mem>>
    %99 = tpu.memref_squeeze %98 : memref<1x!tpu.dma_semaphore, #tpu.memory_space<semaphore_mem>> -> memref<!tpu.dma_semaphore, #tpu.memory_space<semaphore_mem>>
    tpu.enqueue_dma source(%95 : memref<128xf32, #tpu.memory_space<vmem>>) target(%97 : memref<128xf32, #tpu.memory_space<vmem>>) target_semaphore(%99 : memref<!tpu.dma_semaphore, #tpu.memory_space<semaphore_mem>>)
    %c11_i32 = arith.constant 11 : i32
    %100 = arith.addi %0, %c11_i32 : i32
    %101 = arith.index_cast %100 : i32 to index
    %102 = memref.load %arg1[%101] : memref<16xi32, #tpu.memory_space<smem>>
    %c11_i32_44 = arith.constant 11 : i32
    %c11_i32_45 = arith.constant 11 : i32
    %c0_i32_46 = arith.constant 0 : i32
    %103 = tpu.memref_slice %arg2[%102, %c0_i32_46] : memref<64x128xf32, #tpu.memory_space<vmem>> -> memref<1x128xf32, #tpu.memory_space<vmem>>
    %104 = tpu.memref_squeeze %103 : memref<1x128xf32, #tpu.memory_space<vmem>> -> memref<128xf32, #tpu.memory_space<vmem>>
    %c0_i32_47 = arith.constant 0 : i32
    %105 = tpu.memref_slice %arg3[%c11_i32_44, %c0_i32_47] : memref<16x128xf32, #tpu.memory_space<vmem>> -> memref<1x128xf32, #tpu.memory_space<vmem>>
    %106 = tpu.memref_squeeze %105 : memref<1x128xf32, #tpu.memory_space<vmem>> -> memref<128xf32, #tpu.memory_space<vmem>>
    %107 = tpu.memref_slice %arg4[%c11_i32_45] : memref<16x!tpu.dma_semaphore, #tpu.memory_space<semaphore_mem>> -> memref<1x!tpu.dma_semaphore, #tpu.memory_space<semaphore_mem>>
    %108 = tpu.memref_squeeze %107 : memref<1x!tpu.dma_semaphore, #tpu.memory_space<semaphore_mem>> -> memref<!tpu.dma_semaphore, #tpu.memory_space<semaphore_mem>>
    tpu.enqueue_dma source(%104 : memref<128xf32, #tpu.memory_space<vmem>>) target(%106 : memref<128xf32, #tpu.memory_space<vmem>>) target_semaphore(%108 : memref<!tpu.dma_semaphore, #tpu.memory_space<semaphore_mem>>)
    %c12_i32 = arith.constant 12 : i32
    %109 = arith.addi %0, %c12_i32 : i32
    %110 = arith.index_cast %109 : i32 to index
    %111 = memref.load %arg1[%110] : memref<16xi32, #tpu.memory_space<smem>>
    %c12_i32_48 = arith.constant 12 : i32
    %c12_i32_49 = arith.constant 12 : i32
    %c0_i32_50 = arith.constant 0 : i32
    %112 = tpu.memref_slice %arg2[%111, %c0_i32_50] : memref<64x128xf32, #tpu.memory_space<vmem>> -> memref<1x128xf32, #tpu.memory_space<vmem>>
    %113 = tpu.memref_squeeze %112 : memref<1x128xf32, #tpu.memory_space<vmem>> -> memref<128xf32, #tpu.memory_space<vmem>>
    %c0_i32_51 = arith.constant 0 : i32
    %114 = tpu.memref_slice %arg3[%c12_i32_48, %c0_i32_51] : memref<16x128xf32, #tpu.memory_space<vmem>> -> memref<1x128xf32, #tpu.memory_space<vmem>>
    %115 = tpu.memref_squeeze %114 : memref<1x128xf32, #tpu.memory_space<vmem>> -> memref<128xf32, #tpu.memory_space<vmem>>
    %116 = tpu.memref_slice %arg4[%c12_i32_49] : memref<16x!tpu.dma_semaphore, #tpu.memory_space<semaphore_mem>> -> memref<1x!tpu.dma_semaphore, #tpu.memory_space<semaphore_mem>>
    %117 = tpu.memref_squeeze %116 : memref<1x!tpu.dma_semaphore, #tpu.memory_space<semaphore_mem>> -> memref<!tpu.dma_semaphore, #tpu.memory_space<semaphore_mem>>
    tpu.enqueue_dma source(%113 : memref<128xf32, #tpu.memory_space<vmem>>) target(%115 : memref<128xf32, #tpu.memory_space<vmem>>) target_semaphore(%117 : memref<!tpu.dma_semaphore, #tpu.memory_space<semaphore_mem>>)
    %c13_i32 = arith.constant 13 : i32
    %118 = arith.addi %0, %c13_i32 : i32
    %119 = arith.index_cast %118 : i32 to index
    %120 = memref.load %arg1[%119] : memref<16xi32, #tpu.memory_space<smem>>
    %c13_i32_52 = arith.constant 13 : i32
    %c13_i32_53 = arith.constant 13 : i32
    %c0_i32_54 = arith.constant 0 : i32
    %121 = tpu.memref_slice %arg2[%120, %c0_i32_54] : memref<64x128xf32, #tpu.memory_space<vmem>> -> memref<1x128xf32, #tpu.memory_space<vmem>>
    %122 = tpu.memref_squeeze %121 : memref<1x128xf32, #tpu.memory_space<vmem>> -> memref<128xf32, #tpu.memory_space<vmem>>
    %c0_i32_55 = arith.constant 0 : i32
    %123 = tpu.memref_slice %arg3[%c13_i32_52, %c0_i32_55] : memref<16x128xf32, #tpu.memory_space<vmem>> -> memref<1x128xf32, #tpu.memory_space<vmem>>
    %124 = tpu.memref_squeeze %123 : memref<1x128xf32, #tpu.memory_space<vmem>> -> memref<128xf32, #tpu.memory_space<vmem>>
    %125 = tpu.memref_slice %arg4[%c13_i32_53] : memref<16x!tpu.dma_semaphore, #tpu.memory_space<semaphore_mem>> -> memref<1x!tpu.dma_semaphore, #tpu.memory_space<semaphore_mem>>
    %126 = tpu.memref_squeeze %125 : memref<1x!tpu.dma_semaphore, #tpu.memory_space<semaphore_mem>> -> memref<!tpu.dma_semaphore, #tpu.memory_space<semaphore_mem>>
    tpu.enqueue_dma source(%122 : memref<128xf32, #tpu.memory_space<vmem>>) target(%124 : memref<128xf32, #tpu.memory_space<vmem>>) target_semaphore(%126 : memref<!tpu.dma_semaphore, #tpu.memory_space<semaphore_mem>>)
    %c14_i32 = arith.constant 14 : i32
    %127 = arith.addi %0, %c14_i32 : i32
    %128 = arith.index_cast %127 : i32 to index
    %129 = memref.load %arg1[%128] : memref<16xi32, #tpu.memory_space<smem>>
    %c14_i32_56 = arith.constant 14 : i32
    %c14_i32_57 = arith.constant 14 : i32
    %c0_i32_58 = arith.constant 0 : i32
    %130 = tpu.memref_slice %arg2[%129, %c0_i32_58] : memref<64x128xf32, #tpu.memory_space<vmem>> -> memref<1x128xf32, #tpu.memory_space<vmem>>
    %131 = tpu.memref_squeeze %130 : memref<1x128xf32, #tpu.memory_space<vmem>> -> memref<128xf32, #tpu.memory_space<vmem>>
    %c0_i32_59 = arith.constant 0 : i32
    %132 = tpu.memref_slice %arg3[%c14_i32_56, %c0_i32_59] : memref<16x128xf32, #tpu.memory_space<vmem>> -> memref<1x128xf32, #tpu.memory_space<vmem>>
    %133 = tpu.memref_squeeze %132 : memref<1x128xf32, #tpu.memory_space<vmem>> -> memref<128xf32, #tpu.memory_space<vmem>>
    %134 = tpu.memref_slice %arg4[%c14_i32_57] : memref<16x!tpu.dma_semaphore, #tpu.memory_space<semaphore_mem>> -> memref<1x!tpu.dma_semaphore, #tpu.memory_space<semaphore_mem>>
    %135 = tpu.memref_squeeze %134 : memref<1x!tpu.dma_semaphore, #tpu.memory_space<semaphore_mem>> -> memref<!tpu.dma_semaphore, #tpu.memory_space<semaphore_mem>>
    tpu.enqueue_dma source(%131 : memref<128xf32, #tpu.memory_space<vmem>>) target(%133 : memref<128xf32, #tpu.memory_space<vmem>>) target_semaphore(%135 : memref<!tpu.dma_semaphore, #tpu.memory_space<semaphore_mem>>)
    %c15_i32 = arith.constant 15 : i32
    %136 = arith.addi %0, %c15_i32 : i32
    %137 = arith.index_cast %136 : i32 to index
    %138 = memref.load %arg1[%137] : memref<16xi32, #tpu.memory_space<smem>>
    %c15_i32_60 = arith.constant 15 : i32
    %c15_i32_61 = arith.constant 15 : i32
    %c0_i32_62 = arith.constant 0 : i32
    %139 = tpu.memref_slice %arg2[%138, %c0_i32_62] : memref<64x128xf32, #tpu.memory_space<vmem>> -> memref<1x128xf32, #tpu.memory_space<vmem>>
    %140 = tpu.memref_squeeze %139 : memref<1x128xf32, #tpu.memory_space<vmem>> -> memref<128xf32, #tpu.memory_space<vmem>>
    %c0_i32_63 = arith.constant 0 : i32
    %141 = tpu.memref_slice %arg3[%c15_i32_60, %c0_i32_63] : memref<16x128xf32, #tpu.memory_space<vmem>> -> memref<1x128xf32, #tpu.memory_space<vmem>>
    %142 = tpu.memref_squeeze %141 : memref<1x128xf32, #tpu.memory_space<vmem>> -> memref<128xf32, #tpu.memory_space<vmem>>
    %143 = tpu.memref_slice %arg4[%c15_i32_61] : memref<16x!tpu.dma_semaphore, #tpu.memory_space<semaphore_mem>> -> memref<1x!tpu.dma_semaphore, #tpu.memory_space<semaphore_mem>>
    %144 = tpu.memref_squeeze %143 : memref<1x!tpu.dma_semaphore, #tpu.memory_space<semaphore_mem>> -> memref<!tpu.dma_semaphore, #tpu.memory_space<semaphore_mem>>
    tpu.enqueue_dma source(%140 : memref<128xf32, #tpu.memory_space<vmem>>) target(%142 : memref<128xf32, #tpu.memory_space<vmem>>) target_semaphore(%144 : memref<!tpu.dma_semaphore, #tpu.memory_space<semaphore_mem>>)
    %c0_i32_64 = arith.constant 0 : i32
    %c0_i32_65 = arith.constant 0 : i32
    %c0_i32_66 = arith.constant 0 : i32
    %c0_i32_67 = arith.constant 0 : i32
    %145 = tpu.memref_slice %arg2[%c0_i32_64, %c0_i32_67] : memref<64x128xf32, #tpu.memory_space<vmem>> -> memref<1x128xf32, #tpu.memory_space<vmem>>
    %146 = tpu.memref_squeeze %145 : memref<1x128xf32, #tpu.memory_space<vmem>> -> memref<128xf32, #tpu.memory_space<vmem>>
    %c0_i32_68 = arith.constant 0 : i32
    %147 = tpu.memref_slice %arg3[%c0_i32_65, %c0_i32_68] : memref<16x128xf32, #tpu.memory_space<vmem>> -> memref<1x128xf32, #tpu.memory_space<vmem>>
    %148 = tpu.memref_squeeze %147 : memref<1x128xf32, #tpu.memory_space<vmem>> -> memref<128xf32, #tpu.memory_space<vmem>>
    %149 = tpu.memref_slice %arg4[%c0_i32_66] : memref<16x!tpu.dma_semaphore, #tpu.memory_space<semaphore_mem>> -> memref<1x!tpu.dma_semaphore, #tpu.memory_space<semaphore_mem>>
    %150 = tpu.memref_squeeze %149 : memref<1x!tpu.dma_semaphore, #tpu.memory_space<semaphore_mem>> -> memref<!tpu.dma_semaphore, #tpu.memory_space<semaphore_mem>>
    tpu.wait_dma2 semaphore(%150 : memref<!tpu.dma_semaphore, #tpu.memory_space<semaphore_mem>>) src(%146 : memref<128xf32, #tpu.memory_space<vmem>>) dst(%148 : memref<128xf32, #tpu.memory_space<vmem>>)
    %c0_i32_69 = arith.constant 0 : i32
    %c1_i32_70 = arith.constant 1 : i32
    %c1_i32_71 = arith.constant 1 : i32
    %c0_i32_72 = arith.constant 0 : i32
    %151 = tpu.memref_slice %arg2[%c0_i32_69, %c0_i32_72] : memref<64x128xf32, #tpu.memory_space<vmem>> -> memref<1x128xf32, #tpu.memory_space<vmem>>
    %152 = tpu.memref_squeeze %151 : memref<1x128xf32, #tpu.memory_space<vmem>> -> memref<128xf32, #tpu.memory_space<vmem>>
    %c0_i32_73 = arith.constant 0 : i32
    %153 = tpu.memref_slice %arg3[%c1_i32_70, %c0_i32_73] : memref<16x128xf32, #tpu.memory_space<vmem>> -> memref<1x128xf32, #tpu.memory_space<vmem>>
    %154 = tpu.memref_squeeze %153 : memref<1x128xf32, #tpu.memory_space<vmem>> -> memref<128xf32, #tpu.memory_space<vmem>>
    %155 = tpu.memref_slice %arg4[%c1_i32_71] : memref<16x!tpu.dma_semaphore, #tpu.memory_space<semaphore_mem>> -> memref<1x!tpu.dma_semaphore, #tpu.memory_space<semaphore_mem>>
    %156 = tpu.memref_squeeze %155 : memref<1x!tpu.dma_semaphore, #tpu.memory_space<semaphore_mem>> -> memref<!tpu.dma_semaphore, #tpu.memory_space<semaphore_mem>>
    tpu.wait_dma2 semaphore(%156 : memref<!tpu.dma_semaphore, #tpu.memory_space<semaphore_mem>>) src(%152 : memref<128xf32, #tpu.memory_space<vmem>>) dst(%154 : memref<128xf32, #tpu.memory_space<vmem>>)
    %c0_i32_74 = arith.constant 0 : i32
    %c2_i32_75 = arith.constant 2 : i32
    %c2_i32_76 = arith.constant 2 : i32
    %c0_i32_77 = arith.constant 0 : i32
    %157 = tpu.memref_slice %arg2[%c0_i32_74, %c0_i32_77] : memref<64x128xf32, #tpu.memory_space<vmem>> -> memref<1x128xf32, #tpu.memory_space<vmem>>
    %158 = tpu.memref_squeeze %157 : memref<1x128xf32, #tpu.memory_space<vmem>> -> memref<128xf32, #tpu.memory_space<vmem>>
    %c0_i32_78 = arith.constant 0 : i32
    %159 = tpu.memref_slice %arg3[%c2_i32_75, %c0_i32_78] : memref<16x128xf32, #tpu.memory_space<vmem>> -> memref<1x128xf32, #tpu.memory_space<vmem>>
    %160 = tpu.memref_squeeze %159 : memref<1x128xf32, #tpu.memory_space<vmem>> -> memref<128xf32, #tpu.memory_space<vmem>>
    %161 = tpu.memref_slice %arg4[%c2_i32_76] : memref<16x!tpu.dma_semaphore, #tpu.memory_space<semaphore_mem>> -> memref<1x!tpu.dma_semaphore, #tpu.memory_space<semaphore_mem>>
    %162 = tpu.memref_squeeze %161 : memref<1x!tpu.dma_semaphore, #tpu.memory_space<semaphore_mem>> -> memref<!tpu.dma_semaphore, #tpu.memory_space<semaphore_mem>>
    tpu.wait_dma2 semaphore(%162 : memref<!tpu.dma_semaphore, #tpu.memory_space<semaphore_mem>>) src(%158 : memref<128xf32, #tpu.memory_space<vmem>>) dst(%160 : memref<128xf32, #tpu.memory_space<vmem>>)
    %c0_i32_79 = arith.constant 0 : i32
    %c3_i32_80 = arith.constant 3 : i32
    %c3_i32_81 = arith.constant 3 : i32
    %c0_i32_82 = arith.constant 0 : i32
    %163 = tpu.memref_slice %arg2[%c0_i32_79, %c0_i32_82] : memref<64x128xf32, #tpu.memory_space<vmem>> -> memref<1x128xf32, #tpu.memory_space<vmem>>
    %164 = tpu.memref_squeeze %163 : memref<1x128xf32, #tpu.memory_space<vmem>> -> memref<128xf32, #tpu.memory_space<vmem>>
    %c0_i32_83 = arith.constant 0 : i32
    %165 = tpu.memref_slice %arg3[%c3_i32_80, %c0_i32_83] : memref<16x128xf32, #tpu.memory_space<vmem>> -> memref<1x128xf32, #tpu.memory_space<vmem>>
    %166 = tpu.memref_squeeze %165 : memref<1x128xf32, #tpu.memory_space<vmem>> -> memref<128xf32, #tpu.memory_space<vmem>>
    %167 = tpu.memref_slice %arg4[%c3_i32_81] : memref<16x!tpu.dma_semaphore, #tpu.memory_space<semaphore_mem>> -> memref<1x!tpu.dma_semaphore, #tpu.memory_space<semaphore_mem>>
    %168 = tpu.memref_squeeze %167 : memref<1x!tpu.dma_semaphore, #tpu.memory_space<semaphore_mem>> -> memref<!tpu.dma_semaphore, #tpu.memory_space<semaphore_mem>>
    tpu.wait_dma2 semaphore(%168 : memref<!tpu.dma_semaphore, #tpu.memory_space<semaphore_mem>>) src(%164 : memref<128xf32, #tpu.memory_space<vmem>>) dst(%166 : memref<128xf32, #tpu.memory_space<vmem>>)
    %c0_i32_84 = arith.constant 0 : i32
    %c4_i32_85 = arith.constant 4 : i32
    %c4_i32_86 = arith.constant 4 : i32
    %c0_i32_87 = arith.constant 0 : i32
    %169 = tpu.memref_slice %arg2[%c0_i32_84, %c0_i32_87] : memref<64x128xf32, #tpu.memory_space<vmem>> -> memref<1x128xf32, #tpu.memory_space<vmem>>
    %170 = tpu.memref_squeeze %169 : memref<1x128xf32, #tpu.memory_space<vmem>> -> memref<128xf32, #tpu.memory_space<vmem>>
    %c0_i32_88 = arith.constant 0 : i32
    %171 = tpu.memref_slice %arg3[%c4_i32_85, %c0_i32_88] : memref<16x128xf32, #tpu.memory_space<vmem>> -> memref<1x128xf32, #tpu.memory_space<vmem>>
    %172 = tpu.memref_squeeze %171 : memref<1x128xf32, #tpu.memory_space<vmem>> -> memref<128xf32, #tpu.memory_space<vmem>>
    %173 = tpu.memref_slice %arg4[%c4_i32_86] : memref<16x!tpu.dma_semaphore, #tpu.memory_space<semaphore_mem>> -> memref<1x!tpu.dma_semaphore, #tpu.memory_space<semaphore_mem>>
    %174 = tpu.memref_squeeze %173 : memref<1x!tpu.dma_semaphore, #tpu.memory_space<semaphore_mem>> -> memref<!tpu.dma_semaphore, #tpu.memory_space<semaphore_mem>>
    tpu.wait_dma2 semaphore(%174 : memref<!tpu.dma_semaphore, #tpu.memory_space<semaphore_mem>>) src(%170 : memref<128xf32, #tpu.memory_space<vmem>>) dst(%172 : memref<128xf32, #tpu.memory_space<vmem>>)
    %c0_i32_89 = arith.constant 0 : i32
    %c5_i32_90 = arith.constant 5 : i32
    %c5_i32_91 = arith.constant 5 : i32
    %c0_i32_92 = arith.constant 0 : i32
    %175 = tpu.memref_slice %arg2[%c0_i32_89, %c0_i32_92] : memref<64x128xf32, #tpu.memory_space<vmem>> -> memref<1x128xf32, #tpu.memory_space<vmem>>
    %176 = tpu.memref_squeeze %175 : memref<1x128xf32, #tpu.memory_space<vmem>> -> memref<128xf32, #tpu.memory_space<vmem>>
    %c0_i32_93 = arith.constant 0 : i32
    %177 = tpu.memref_slice %arg3[%c5_i32_90, %c0_i32_93] : memref<16x128xf32, #tpu.memory_space<vmem>> -> memref<1x128xf32, #tpu.memory_space<vmem>>
    %178 = tpu.memref_squeeze %177 : memref<1x128xf32, #tpu.memory_space<vmem>> -> memref<128xf32, #tpu.memory_space<vmem>>
    %179 = tpu.memref_slice %arg4[%c5_i32_91] : memref<16x!tpu.dma_semaphore, #tpu.memory_space<semaphore_mem>> -> memref<1x!tpu.dma_semaphore, #tpu.memory_space<semaphore_mem>>
    %180 = tpu.memref_squeeze %179 : memref<1x!tpu.dma_semaphore, #tpu.memory_space<semaphore_mem>> -> memref<!tpu.dma_semaphore, #tpu.memory_space<semaphore_mem>>
    tpu.wait_dma2 semaphore(%180 : memref<!tpu.dma_semaphore, #tpu.memory_space<semaphore_mem>>) src(%176 : memref<128xf32, #tpu.memory_space<vmem>>) dst(%178 : memref<128xf32, #tpu.memory_space<vmem>>)
    %c0_i32_94 = arith.constant 0 : i32
    %c6_i32_95 = arith.constant 6 : i32
    %c6_i32_96 = arith.constant 6 : i32
    %c0_i32_97 = arith.constant 0 : i32
    %181 = tpu.memref_slice %arg2[%c0_i32_94, %c0_i32_97] : memref<64x128xf32, #tpu.memory_space<vmem>> -> memref<1x128xf32, #tpu.memory_space<vmem>>
    %182 = tpu.memref_squeeze %181 : memref<1x128xf32, #tpu.memory_space<vmem>> -> memref<128xf32, #tpu.memory_space<vmem>>
    %c0_i32_98 = arith.constant 0 : i32
    %183 = tpu.memref_slice %arg3[%c6_i32_95, %c0_i32_98] : memref<16x128xf32, #tpu.memory_space<vmem>> -> memref<1x128xf32, #tpu.memory_space<vmem>>
    %184 = tpu.memref_squeeze %183 : memref<1x128xf32, #tpu.memory_space<vmem>> -> memref<128xf32, #tpu.memory_space<vmem>>
    %185 = tpu.memref_slice %arg4[%c6_i32_96] : memref<16x!tpu.dma_semaphore, #tpu.memory_space<semaphore_mem>> -> memref<1x!tpu.dma_semaphore, #tpu.memory_space<semaphore_mem>>
    %186 = tpu.memref_squeeze %185 : memref<1x!tpu.dma_semaphore, #tpu.memory_space<semaphore_mem>> -> memref<!tpu.dma_semaphore, #tpu.memory_space<semaphore_mem>>
    tpu.wait_dma2 semaphore(%186 : memref<!tpu.dma_semaphore, #tpu.memory_space<semaphore_mem>>) src(%182 : memref<128xf32, #tpu.memory_space<vmem>>) dst(%184 : memref<128xf32, #tpu.memory_space<vmem>>)
    %c0_i32_99 = arith.constant 0 : i32
    %c7_i32_100 = arith.constant 7 : i32
    %c7_i32_101 = arith.constant 7 : i32
    %c0_i32_102 = arith.constant 0 : i32
    %187 = tpu.memref_slice %arg2[%c0_i32_99, %c0_i32_102] : memref<64x128xf32, #tpu.memory_space<vmem>> -> memref<1x128xf32, #tpu.memory_space<vmem>>
    %188 = tpu.memref_squeeze %187 : memref<1x128xf32, #tpu.memory_space<vmem>> -> memref<128xf32, #tpu.memory_space<vmem>>
    %c0_i32_103 = arith.constant 0 : i32
    %189 = tpu.memref_slice %arg3[%c7_i32_100, %c0_i32_103] : memref<16x128xf32, #tpu.memory_space<vmem>> -> memref<1x128xf32, #tpu.memory_space<vmem>>
    %190 = tpu.memref_squeeze %189 : memref<1x128xf32, #tpu.memory_space<vmem>> -> memref<128xf32, #tpu.memory_space<vmem>>
    %191 = tpu.memref_slice %arg4[%c7_i32_101] : memref<16x!tpu.dma_semaphore, #tpu.memory_space<semaphore_mem>> -> memref<1x!tpu.dma_semaphore, #tpu.memory_space<semaphore_mem>>
    %192 = tpu.memref_squeeze %191 : memref<1x!tpu.dma_semaphore, #tpu.memory_space<semaphore_mem>> -> memref<!tpu.dma_semaphore, #tpu.memory_space<semaphore_mem>>
    tpu.wait_dma2 semaphore(%192 : memref<!tpu.dma_semaphore, #tpu.memory_space<semaphore_mem>>) src(%188 : memref<128xf32, #tpu.memory_space<vmem>>) dst(%190 : memref<128xf32, #tpu.memory_space<vmem>>)
    %c0_i32_104 = arith.constant 0 : i32
    %c8_i32_105 = arith.constant 8 : i32
    %c8_i32_106 = arith.constant 8 : i32
    %c0_i32_107 = arith.constant 0 : i32
    %193 = tpu.memref_slice %arg2[%c0_i32_104, %c0_i32_107] : memref<64x128xf32, #tpu.memory_space<vmem>> -> memref<1x128xf32, #tpu.memory_space<vmem>>
    %194 = tpu.memref_squeeze %193 : memref<1x128xf32, #tpu.memory_space<vmem>> -> memref<128xf32, #tpu.memory_space<vmem>>
    %c0_i32_108 = arith.constant 0 : i32
    %195 = tpu.memref_slice %arg3[%c8_i32_105, %c0_i32_108] : memref<16x128xf32, #tpu.memory_space<vmem>> -> memref<1x128xf32, #tpu.memory_space<vmem>>
    %196 = tpu.memref_squeeze %195 : memref<1x128xf32, #tpu.memory_space<vmem>> -> memref<128xf32, #tpu.memory_space<vmem>>
    %197 = tpu.memref_slice %arg4[%c8_i32_106] : memref<16x!tpu.dma_semaphore, #tpu.memory_space<semaphore_mem>> -> memref<1x!tpu.dma_semaphore, #tpu.memory_space<semaphore_mem>>
    %198 = tpu.memref_squeeze %197 : memref<1x!tpu.dma_semaphore, #tpu.memory_space<semaphore_mem>> -> memref<!tpu.dma_semaphore, #tpu.memory_space<semaphore_mem>>
    tpu.wait_dma2 semaphore(%198 : memref<!tpu.dma_semaphore, #tpu.memory_space<semaphore_mem>>) src(%194 : memref<128xf32, #tpu.memory_space<vmem>>) dst(%196 : memref<128xf32, #tpu.memory_space<vmem>>)
    %c0_i32_109 = arith.constant 0 : i32
    %c9_i32_110 = arith.constant 9 : i32
    %c9_i32_111 = arith.constant 9 : i32
    %c0_i32_112 = arith.constant 0 : i32
    %199 = tpu.memref_slice %arg2[%c0_i32_109, %c0_i32_112] : memref<64x128xf32, #tpu.memory_space<vmem>> -> memref<1x128xf32, #tpu.memory_space<vmem>>
    %200 = tpu.memref_squeeze %199 : memref<1x128xf32, #tpu.memory_space<vmem>> -> memref<128xf32, #tpu.memory_space<vmem>>
    %c0_i32_113 = arith.constant 0 : i32
    %201 = tpu.memref_slice %arg3[%c9_i32_110, %c0_i32_113] : memref<16x128xf32, #tpu.memory_space<vmem>> -> memref<1x128xf32, #tpu.memory_space<vmem>>
    %202 = tpu.memref_squeeze %201 : memref<1x128xf32, #tpu.memory_space<vmem>> -> memref<128xf32, #tpu.memory_space<vmem>>
    %203 = tpu.memref_slice %arg4[%c9_i32_111] : memref<16x!tpu.dma_semaphore, #tpu.memory_space<semaphore_mem>> -> memref<1x!tpu.dma_semaphore, #tpu.memory_space<semaphore_mem>>
    %204 = tpu.memref_squeeze %203 : memref<1x!tpu.dma_semaphore, #tpu.memory_space<semaphore_mem>> -> memref<!tpu.dma_semaphore, #tpu.memory_space<semaphore_mem>>
    tpu.wait_dma2 semaphore(%204 : memref<!tpu.dma_semaphore, #tpu.memory_space<semaphore_mem>>) src(%200 : memref<128xf32, #tpu.memory_space<vmem>>) dst(%202 : memref<128xf32, #tpu.memory_space<vmem>>)
    %c0_i32_114 = arith.constant 0 : i32
    %c10_i32_115 = arith.constant 10 : i32
    %c10_i32_116 = arith.constant 10 : i32
    %c0_i32_117 = arith.constant 0 : i32
    %205 = tpu.memref_slice %arg2[%c0_i32_114, %c0_i32_117] : memref<64x128xf32, #tpu.memory_space<vmem>> -> memref<1x128xf32, #tpu.memory_space<vmem>>
    %206 = tpu.memref_squeeze %205 : memref<1x128xf32, #tpu.memory_space<vmem>> -> memref<128xf32, #tpu.memory_space<vmem>>
    %c0_i32_118 = arith.constant 0 : i32
    %207 = tpu.memref_slice %arg3[%c10_i32_115, %c0_i32_118] : memref<16x128xf32, #tpu.memory_space<vmem>> -> memref<1x128xf32, #tpu.memory_space<vmem>>
    %208 = tpu.memref_squeeze %207 : memref<1x128xf32, #tpu.memory_space<vmem>> -> memref<128xf32, #tpu.memory_space<vmem>>
    %209 = tpu.memref_slice %arg4[%c10_i32_116] : memref<16x!tpu.dma_semaphore, #tpu.memory_space<semaphore_mem>> -> memref<1x!tpu.dma_semaphore, #tpu.memory_space<semaphore_mem>>
    %210 = tpu.memref_squeeze %209 : memref<1x!tpu.dma_semaphore, #tpu.memory_space<semaphore_mem>> -> memref<!tpu.dma_semaphore, #tpu.memory_space<semaphore_mem>>
    tpu.wait_dma2 semaphore(%210 : memref<!tpu.dma_semaphore, #tpu.memory_space<semaphore_mem>>) src(%206 : memref<128xf32, #tpu.memory_space<vmem>>) dst(%208 : memref<128xf32, #tpu.memory_space<vmem>>)
    %c0_i32_119 = arith.constant 0 : i32
    %c11_i32_120 = arith.constant 11 : i32
    %c11_i32_121 = arith.constant 11 : i32
    %c0_i32_122 = arith.constant 0 : i32
    %211 = tpu.memref_slice %arg2[%c0_i32_119, %c0_i32_122] : memref<64x128xf32, #tpu.memory_space<vmem>> -> memref<1x128xf32, #tpu.memory_space<vmem>>
    %212 = tpu.memref_squeeze %211 : memref<1x128xf32, #tpu.memory_space<vmem>> -> memref<128xf32, #tpu.memory_space<vmem>>
    %c0_i32_123 = arith.constant 0 : i32
    %213 = tpu.memref_slice %arg3[%c11_i32_120, %c0_i32_123] : memref<16x128xf32, #tpu.memory_space<vmem>> -> memref<1x128xf32, #tpu.memory_space<vmem>>
    %214 = tpu.memref_squeeze %213 : memref<1x128xf32, #tpu.memory_space<vmem>> -> memref<128xf32, #tpu.memory_space<vmem>>
    %215 = tpu.memref_slice %arg4[%c11_i32_121] : memref<16x!tpu.dma_semaphore, #tpu.memory_space<semaphore_mem>> -> memref<1x!tpu.dma_semaphore, #tpu.memory_space<semaphore_mem>>
    %216 = tpu.memref_squeeze %215 : memref<1x!tpu.dma_semaphore, #tpu.memory_space<semaphore_mem>> -> memref<!tpu.dma_semaphore, #tpu.memory_space<semaphore_mem>>
    tpu.wait_dma2 semaphore(%216 : memref<!tpu.dma_semaphore, #tpu.memory_space<semaphore_mem>>) src(%212 : memref<128xf32, #tpu.memory_space<vmem>>) dst(%214 : memref<128xf32, #tpu.memory_space<vmem>>)
    %c0_i32_124 = arith.constant 0 : i32
    %c12_i32_125 = arith.constant 12 : i32
    %c12_i32_126 = arith.constant 12 : i32
    %c0_i32_127 = arith.constant 0 : i32
    %217 = tpu.memref_slice %arg2[%c0_i32_124, %c0_i32_127] : memref<64x128xf32, #tpu.memory_space<vmem>> -> memref<1x128xf32, #tpu.memory_space<vmem>>
    %218 = tpu.memref_squeeze %217 : memref<1x128xf32, #tpu.memory_space<vmem>> -> memref<128xf32, #tpu.memory_space<vmem>>
    %c0_i32_128 = arith.constant 0 : i32
    %219 = tpu.memref_slice %arg3[%c12_i32_125, %c0_i32_128] : memref<16x128xf32, #tpu.memory_space<vmem>> -> memref<1x128xf32, #tpu.memory_space<vmem>>
    %220 = tpu.memref_squeeze %219 : memref<1x128xf32, #tpu.memory_space<vmem>> -> memref<128xf32, #tpu.memory_space<vmem>>
    %221 = tpu.memref_slice %arg4[%c12_i32_126] : memref<16x!tpu.dma_semaphore, #tpu.memory_space<semaphore_mem>> -> memref<1x!tpu.dma_semaphore, #tpu.memory_space<semaphore_mem>>
    %222 = tpu.memref_squeeze %221 : memref<1x!tpu.dma_semaphore, #tpu.memory_space<semaphore_mem>> -> memref<!tpu.dma_semaphore, #tpu.memory_space<semaphore_mem>>
    tpu.wait_dma2 semaphore(%222 : memref<!tpu.dma_semaphore, #tpu.memory_space<semaphore_mem>>) src(%218 : memref<128xf32, #tpu.memory_space<vmem>>) dst(%220 : memref<128xf32, #tpu.memory_space<vmem>>)
    %c0_i32_129 = arith.constant 0 : i32
    %c13_i32_130 = arith.constant 13 : i32
    %c13_i32_131 = arith.constant 13 : i32
    %c0_i32_132 = arith.constant 0 : i32
    %223 = tpu.memref_slice %arg2[%c0_i32_129, %c0_i32_132] : memref<64x128xf32, #tpu.memory_space<vmem>> -> memref<1x128xf32, #tpu.memory_space<vmem>>
    %224 = tpu.memref_squeeze %223 : memref<1x128xf32, #tpu.memory_space<vmem>> -> memref<128xf32, #tpu.memory_space<vmem>>
    %c0_i32_133 = arith.constant 0 : i32
    %225 = tpu.memref_slice %arg3[%c13_i32_130, %c0_i32_133] : memref<16x128xf32, #tpu.memory_space<vmem>> -> memref<1x128xf32, #tpu.memory_space<vmem>>
    %226 = tpu.memref_squeeze %225 : memref<1x128xf32, #tpu.memory_space<vmem>> -> memref<128xf32, #tpu.memory_space<vmem>>
    %227 = tpu.memref_slice %arg4[%c13_i32_131] : memref<16x!tpu.dma_semaphore, #tpu.memory_space<semaphore_mem>> -> memref<1x!tpu.dma_semaphore, #tpu.memory_space<semaphore_mem>>
    %228 = tpu.memref_squeeze %227 : memref<1x!tpu.dma_semaphore, #tpu.memory_space<semaphore_mem>> -> memref<!tpu.dma_semaphore, #tpu.memory_space<semaphore_mem>>
    tpu.wait_dma2 semaphore(%228 : memref<!tpu.dma_semaphore, #tpu.memory_space<semaphore_mem>>) src(%224 : memref<128xf32, #tpu.memory_space<vmem>>) dst(%226 : memref<128xf32, #tpu.memory_space<vmem>>)
    %c0_i32_134 = arith.constant 0 : i32
    %c14_i32_135 = arith.constant 14 : i32
    %c14_i32_136 = arith.constant 14 : i32
    %c0_i32_137 = arith.constant 0 : i32
    %229 = tpu.memref_slice %arg2[%c0_i32_134, %c0_i32_137] : memref<64x128xf32, #tpu.memory_space<vmem>> -> memref<1x128xf32, #tpu.memory_space<vmem>>
    %230 = tpu.memref_squeeze %229 : memref<1x128xf32, #tpu.memory_space<vmem>> -> memref<128xf32, #tpu.memory_space<vmem>>
    %c0_i32_138 = arith.constant 0 : i32
    %231 = tpu.memref_slice %arg3[%c14_i32_135, %c0_i32_138] : memref<16x128xf32, #tpu.memory_space<vmem>> -> memref<1x128xf32, #tpu.memory_space<vmem>>
    %232 = tpu.memref_squeeze %231 : memref<1x128xf32, #tpu.memory_space<vmem>> -> memref<128xf32, #tpu.memory_space<vmem>>
    %233 = tpu.memref_slice %arg4[%c14_i32_136] : memref<16x!tpu.dma_semaphore, #tpu.memory_space<semaphore_mem>> -> memref<1x!tpu.dma_semaphore, #tpu.memory_space<semaphore_mem>>
    %234 = tpu.memref_squeeze %233 : memref<1x!tpu.dma_semaphore, #tpu.memory_space<semaphore_mem>> -> memref<!tpu.dma_semaphore, #tpu.memory_space<semaphore_mem>>
    tpu.wait_dma2 semaphore(%234 : memref<!tpu.dma_semaphore, #tpu.memory_space<semaphore_mem>>) src(%230 : memref<128xf32, #tpu.memory_space<vmem>>) dst(%232 : memref<128xf32, #tpu.memory_space<vmem>>)
    %c0_i32_139 = arith.constant 0 : i32
    %c15_i32_140 = arith.constant 15 : i32
    %c15_i32_141 = arith.constant 15 : i32
    %c0_i32_142 = arith.constant 0 : i32
    %235 = tpu.memref_slice %arg2[%c0_i32_139, %c0_i32_142] : memref<64x128xf32, #tpu.memory_space<vmem>> -> memref<1x128xf32, #tpu.memory_space<vmem>>
    %236 = tpu.memref_squeeze %235 : memref<1x128xf32, #tpu.memory_space<vmem>> -> memref<128xf32, #tpu.memory_space<vmem>>
    %c0_i32_143 = arith.constant 0 : i32
    %237 = tpu.memref_slice %arg3[%c15_i32_140, %c0_i32_143] : memref<16x128xf32, #tpu.memory_space<vmem>> -> memref<1x128xf32, #tpu.memory_space<vmem>>
    %238 = tpu.memref_squeeze %237 : memref<1x128xf32, #tpu.memory_space<vmem>> -> memref<128xf32, #tpu.memory_space<vmem>>
    %239 = tpu.memref_slice %arg4[%c15_i32_141] : memref<16x!tpu.dma_semaphore, #tpu.memory_space<semaphore_mem>> -> memref<1x!tpu.dma_semaphore, #tpu.memory_space<semaphore_mem>>
    %240 = tpu.memref_squeeze %239 : memref<1x!tpu.dma_semaphore, #tpu.memory_space<semaphore_mem>> -> memref<!tpu.dma_semaphore, #tpu.memory_space<semaphore_mem>>
    tpu.wait_dma2 semaphore(%240 : memref<!tpu.dma_semaphore, #tpu.memory_space<semaphore_mem>>) src(%236 : memref<128xf32, #tpu.memory_space<vmem>>) dst(%238 : memref<128xf32, #tpu.memory_space<vmem>>)
    return
  }
  func.func @transform_0(%arg0: i32, %arg1: memref<16xi32, #tpu.memory_space<smem>>) -> (i32, i32) {
    %c0_i32 = arith.constant 0 : i32
    %c0_i32_0 = arith.constant 0 : i32
    %c0_i32_1 = arith.constant 0 : i32
    return %c0_i32, %c0_i32_0 : i32, i32
  }
  func.func @transform_1(%arg0: i32, %arg1: memref<16xi32, #tpu.memory_space<smem>>) -> (i32, i32) {
    %c0_i32 = arith.constant 0 : i32
    %c0_i32_0 = arith.constant 0 : i32
    return %arg0, %c0_i32 : i32, i32
  }
}

</mosaic_0001>

<bundles_post_ra>
// kernel: tpu_custom_call.1
= control target key start
LH: loop header
LB: loop body
LE: loop exit
PB: predicated region body
PF: predicated region fallthrough
CT: control target
= control target key end

     0   :  { %s1032_s12 = smov [#allocation4]   ;;  %s1067_s0 = inlined_call_operand.hbm [shape: s32[16], index: 0, kind: input, shape index: {}]   ;;  %s1068_s1 = inlined_call_operand.hbm [shape: f32[64,128], index: 1, kind: input, shape index: {}]   ;;  %s1069_s2 = inlined_call_operand.hbm [shape: f32[16,128], index: 2, kind: output, shape index: {}]  }
   0x1   :  { %s8_s11 = sshll.u32 %s1067_s0, 4  ;;  %s9_s11 = int_to_ptr.hbm [resolvable:$true] %s8_s11 }
   0x2   :  { %11 = dma.hbm_to_smem %s9_s11, 16, %s1032_s12, [#allocation3] }
   0x3   :  { %994 = dma.done.wait [#allocation3], 16 }
   0x4   :  { %995 = vsyncadd [#allocation3], 4294967280 }
   0x5   :  { %14 = sfence }
   0x6   :  { %15 = vsyncpa [#allocation6], 0 }
   0x7   :  { %16 = vsyncpa [#allocation7], 0  ;;  %s21_s15 = sshll.u32 %s1068_s1, 4  ;;  %s1033_s16 = smov [#allocation5]   ;;  %s22_s15 = int_to_ptr.hbm [resolvable:$true] %s21_s15 }
   0x8   :  { %s23_s17 = sshll.u32 %s1033_s16, 4  ;;  %s1034_s18 = smov 128   ;;  %s24_s17 = int_to_ptr.vmem [resolvable:$true] %s23_s17 }
   0x9   :  { %s1035_s19 = smov 8  }
   0xa   :  { %29 = dma.hbm_to_vmem [thread:$0]  %s22_s15, 1024, %s24_s17, [#allocation6], %s1034_s18, %s1034_s18, %s1035_s19  }
   0xb   :  { %996 = dma.done.wait [#allocation6], 1024  }
   0xc   :  { %997 = vsyncadd [#allocation6], 4294966272  ;;  %s35_s0 = sld [smem:[#allocation4]] }
  0x12   :  { %s36_s20 = scalar_lea.vmem [#allocation5], %s35_s0 }
  0x13   :  { %v51_v0 = vld [vmem:[%s36_s20] sm:$0x1] }
  0x14   :  { %52 = vst [vmem:[#allocation8] sm:$0x1] %v51_v0 }
  0x15   :  { %70 = vsyncadd [#allocation2], 16  ;;  %s898_s21 = sld [smem:[#allocation4 + $0x1]] }
  0x1b   :  { %s73_s22 = scalar_lea.vmem [#allocation5], %s898_s21 }
  0x1c   :  { %v90_v1 = vld [vmem:[%s73_s22] sm:$0x1] }
  0x1d   :  { %91 = vst [vmem:[#allocation8 + $0x1] sm:$0x1] %v90_v1 }
  0x1e   :  { %109 = vsyncadd [#allocation2 + $0x1], 16  ;;  %s899_s1 = sld [smem:[#allocation4 + $0x2]] }
  0x24   :  { %s112_s23 = scalar_lea.vmem [#allocation5], %s899_s1 }
  0x25   :  { %v129_v2 = vld [vmem:[%s112_s23] sm:$0x1] }
  0x26   :  { %130 = vst [vmem:[#allocation8 + $0x2] sm:$0x1] %v129_v2 }
  0x27   :  { %148 = vsyncadd [#allocation2 + $0x2], 16  ;;  %s900_s24 = sld [smem:[#allocation4 + $0x3]] }
  0x2d   :  { %s151_s25 = scalar_lea.vmem [#allocation5], %s900_s24 }
  0x2e   :  { %v168_v3 = vld [vmem:[%s151_s25] sm:$0x1] }
  0x2f   :  { %169 = vst [vmem:[#allocation8 + $0x3] sm:$0x1] %v168_v3 }
  0x30   :  { %187 = vsyncadd [#allocation2 + $0x3], 16  ;;  %s901_s26 = sld [smem:[#allocation4 + $0x4]] }
  0x36   :  { %s190_s27 = scalar_lea.vmem [#allocation5], %s901_s26 }
  0x37   :  { %v207_v4 = vld [vmem:[%s190_s27] sm:$0x1] }
  0x38   :  { %208 = vst [vmem:[#allocation8 + $0x4] sm:$0x1] %v207_v4 }
  0x39   :  { %226 = vsyncadd [#allocation2 + $0x4], 16  ;;  %s902_s28 = sld [smem:[#allocation4 + $0x5]] }
  0x3f   :  { %s229_s29 = scalar_lea.vmem [#allocation5], %s902_s28 }
  0x40   :  { %v246_v5 = vld [vmem:[%s229_s29] sm:$0x1] }
  0x41   :  { %247 = vst [vmem:[#allocation8 + $0x5] sm:$0x1] %v246_v5 }
  0x42   :  { %265 = vsyncadd [#allocation2 + $0x5], 16  ;;  %s903_s30 = sld [smem:[#allocation4 + $0x6]] }
  0x48   :  { %s268_s3 = scalar_lea.vmem [#allocation5], %s903_s30 }
  0x49   :  { %v285_v6 = vld [vmem:[%s268_s3] sm:$0x1] }
  0x4a   :  { %286 = vst [vmem:[#allocation8 + $0x6] sm:$0x1] %v285_v6 }
  0x4b   :  { %304 = vsyncadd [#allocation2 + $0x6], 16  ;;  %s904_s4 = sld [smem:[#allocation4 + $0x7]] }
  0x51   :  { %s307_s5 = scalar_lea.vmem [#allocation5], %s904_s4 }
  0x52   :  { %v324_v7 = vld [vmem:[%s307_s5] sm:$0x1] }
  0x53   :  { %325 = vst [vmem:[#allocation8 + $0x7] sm:$0x1] %v324_v7 }
  0x54   :  { %343 = vsyncadd [#allocation2 + $0x7], 16  ;;  %s905_s6 = sld [smem:[#allocation4 + $0x8]] }
  0x5a   :  { %s346_s7 = scalar_lea.vmem [#allocation5], %s905_s6 }
  0x5b   :  { %v363_v8 = vld [vmem:[%s346_s7] sm:$0x1] }
  0x5c   :  { %364 = vst [vmem:[#allocation8 + $0x8] sm:$0x1] %v363_v8 }
  0x5d   :  { %382 = vsyncadd [#allocation2 + $0x8], 16  ;;  %s906_s8 = sld [smem:[#allocation4 + $0x9]] }
  0x63   :  { %s385_s9 = scalar_lea.vmem [#allocation5], %s906_s8 }
  0x64   :  { %v402_v9 = vld [vmem:[%s385_s9] sm:$0x1] }
  0x65   :  { %403 = vst [vmem:[#allocation8 + $0x9] sm:$0x1] %v402_v9 }
  0x66   :  { %421 = vsyncadd [#allocation2 + $0x9], 16  ;;  %s907_s10 = sld [smem:[#allocation4 + $0xa]] }
  0x6c   :  { %s424_s11 = scalar_lea.vmem [#allocation5], %s907_s10 }
  0x6d   :  { %v441_v10 = vld [vmem:[%s424_s11] sm:$0x1] }
  0x6e   :  { %442 = vst [vmem:[#allocation8 + $0xa] sm:$0x1] %v441_v10 }
  0x6f   :  { %460 = vsyncadd [#allocation2 + $0xa], 16  ;;  %s908_s12 = sld [smem:[#allocation4 + $0xb]] }
  0x75   :  { %s463_s13 = scalar_lea.vmem [#allocation5], %s908_s12 }
  0x76   :  { %v480_v11 = vld [vmem:[%s463_s13] sm:$0x1] }
  0x77   :  { %481 = vst [vmem:[#allocation8 + $0xb] sm:$0x1] %v480_v11 }
  0x78   :  { %499 = vsyncadd [#allocation2 + $0xb], 16  ;;  %s909_s14 = sld [smem:[#allocation4 + $0xc]] }
  0x7e   :  { %s502_s15 = scalar_lea.vmem [#allocation5], %s909_s14 }
  0x7f   :  { %v519_v12 = vld [vmem:[%s502_s15] sm:$0x1] }
  0x80   :  { %520 = vst [vmem:[#allocation8 + $0xc] sm:$0x1] %v519_v12 }
  0x81   :  { %538 = vsyncadd [#allocation2 + $0xc], 16  ;;  %s910_s16 = sld [smem:[#allocation4 + $0xd]] }
  0x87   :  { %s541_s17 = scalar_lea.vmem [#allocation5], %s910_s16 }
  0x88   :  { %v558_v13 = vld [vmem:[%s541_s17] sm:$0x1] }
  0x89   :  { %559 = vst [vmem:[#allocation8 + $0xd] sm:$0x1] %v558_v13 }
  0x8a   :  { %577 = vsyncadd [#allocation2 + $0xd], 16  ;;  %s911_s0 = sld [smem:[#allocation4 + $0xe]] }
  0x90   :  { %s580_s20 = scalar_lea.vmem [#allocation5], %s911_s0 }
  0x91   :  { %v597_v14 = vld [vmem:[%s580_s20] sm:$0x1] }
  0x92   :  { %598 = vst [vmem:[#allocation8 + $0xe] sm:$0x1] %v597_v14 }
  0x93   :  { %616 = vsyncadd [#allocation2 + $0xe], 16  ;;  %s912_s21 = sld [smem:[#allocation4 + $0xf]] }
  0x99   :  { %s619_s22 = scalar_lea.vmem [#allocation5], %s912_s21 }
  0x9a   :  { %v636_v15 = vld [vmem:[%s619_s22] sm:$0x1] }
  0x9b   :  { %637 = vst [vmem:[#allocation8 + $0xf] sm:$0x1] %v636_v15 }
  0x9c   :  { %655 = vsyncadd [#allocation2 + $0xf], 16 }
  0x9d   :  { %998 = dma.done.wait [#allocation2], 16 }
  0x9e   :  { %999 = vsyncadd [#allocation2], 4294967280 }
  0x9f   :  { %1000 = dma.done.wait [#allocation2 + $0x1], 16 }
  0xa0   :  { %1001 = vsyncadd [#allocation2 + $0x1], 4294967280 }
  0xa1   :  { %1002 = dma.done.wait [#allocation2 + $0x2], 16 }
  0xa2   :  { %1003 = vsyncadd [#allocation2 + $0x2], 4294967280 }
  0xa3   :  { %1004 = dma.done.wait [#allocation2 + $0x3], 16 }
  0xa4   :  { %1005 = vsyncadd [#allocation2 + $0x3], 4294967280 }
  0xa5   :  { %1006 = dma.done.wait [#allocation2 + $0x4], 16 }
  0xa6   :  { %1007 = vsyncadd [#allocation2 + $0x4], 4294967280 }
  0xa7   :  { %1008 = dma.done.wait [#allocation2 + $0x5], 16 }
  0xa8   :  { %1009 = vsyncadd [#allocation2 + $0x5], 4294967280 }
  0xa9   :  { %1010 = dma.done.wait [#allocation2 + $0x6], 16 }
  0xaa   :  { %1011 = vsyncadd [#allocation2 + $0x6], 4294967280 }
  0xab   :  { %1012 = dma.done.wait [#allocation2 + $0x7], 16 }
  0xac   :  { %1013 = vsyncadd [#allocation2 + $0x7], 4294967280 }
  0xad   :  { %1014 = dma.done.wait [#allocation2 + $0x8], 16 }
  0xae   :  { %1015 = vsyncadd [#allocation2 + $0x8], 4294967280 }
  0xaf   :  { %1016 = dma.done.wait [#allocation2 + $0x9], 16 }
  0xb0   :  { %1017 = vsyncadd [#allocation2 + $0x9], 4294967280 }
  0xb1   :  { %1018 = dma.done.wait [#allocation2 + $0xa], 16 }
  0xb2   :  { %1019 = vsyncadd [#allocation2 + $0xa], 4294967280 }
  0xb3   :  { %1020 = dma.done.wait [#allocation2 + $0xb], 16 }
  0xb4   :  { %1021 = vsyncadd [#allocation2 + $0xb], 4294967280 }
  0xb5   :  { %1022 = dma.done.wait [#allocation2 + $0xc], 16 }
  0xb6   :  { %1023 = vsyncadd [#allocation2 + $0xc], 4294967280 }
  0xb7   :  { %1024 = dma.done.wait [#allocation2 + $0xd], 16 }
  0xb8   :  { %1025 = vsyncadd [#allocation2 + $0xd], 4294967280 }
  0xb9   :  { %1026 = dma.done.wait [#allocation2 + $0xe], 16 }
  0xba   :  { %1027 = vsyncadd [#allocation2 + $0xe], 4294967280 }
  0xbb   :  { %1028 = dma.done.wait [#allocation2 + $0xf], 16 }
  0xbc   :  { %1029 = vsyncadd [#allocation2 + $0xf], 4294967280  ;;  %s694_s24 = sshll.u32 %s1069_s2, 4  ;;  %s1036_s25 = smov [#allocation8]   ;;  %s695_s24 = int_to_ptr.hbm [resolvable:$true] %s694_s24 }
  0xbd   :  { %s692_s26 = sshll.u32 %s1036_s25, 4  ;;  %s693_s26 = int_to_ptr.vmem [resolvable:$true] %s692_s26 }
  0xbe   :  { %700 = dma.vmem_to_hbm [thread:$0]  %s693_s26, 256, %s695_s24, [#allocation7], %s1034_s18, %s1034_s18, %s1035_s19  }
  0xbf   :  { %1030 = dma.done.wait [#allocation7], 256  }
  0xc0   :  { %1031 = vsyncadd [#allocation7], 4294967040 }
  0xc1   :  { %705 = vsyncpa [#allocation6], 1 }
  0xc2   :  { %706 = vsyncpa [#allocation7], 1 }
  0xc3   :  { %707 = vsyncmov [#allocation2] }
  0xc6   :  { %s708_s27 = vpop.sfrf %707 }
  0xc7   :  { %p913_p0 = scmp.ne.s32.totalorder %s708_s27, 0 }
  0xc9   :  { %712 = shalt.err (%p913_p0)  }
  0xca   :  { %714 = vsyncmov [#allocation2 + $0x1] }
  0xcd   :  { %s715_s28 = vpop.sfrf %714 }
  0xce   :  { %p914_p1 = scmp.ne.s32.totalorder %s715_s28, 0 }
  0xd0   :  { %719 = shalt.err (%p914_p1)  }
  0xd1   :  { %721 = vsyncmov [#allocation2 + $0x2] }
  0xd4   :  { %s722_s2 = vpop.sfrf %721 }
  0xd5   :  { %p915_p2 = scmp.ne.s32.totalorder %s722_s2, 0 }
  0xd7   :  { %726 = shalt.err (%p915_p2)  }
  0xd8   :  { %728 = vsyncmov [#allocation2 + $0x3] }
  0xdb   :  { %s729_s29 = vpop.sfrf %728 }
  0xdc   :  { %p916_p3 = scmp.ne.s32.totalorder %s729_s29, 0 }
  0xde   :  { %733 = shalt.err (%p916_p3)  }
  0xdf   :  { %735 = vsyncmov [#allocation2 + $0x4] }
  0xe2   :  { %s736_s18 = vpop.sfrf %735 }
  0xe3   :  { %p917_p4 = scmp.ne.s32.totalorder %s736_s18, 0 }
  0xe5   :  { %740 = shalt.err (%p917_p4)  }
  0xe6   :  { %742 = vsyncmov [#allocation2 + $0x5] }
  0xe9   :  { %s743_s19 = vpop.sfrf %742 }
  0xea   :  { %p918_p5 = scmp.ne.s32.totalorder %s743_s19, 0 }
  0xec   :  { %747 = shalt.err (%p918_p5)  }
  0xed   :  { %749 = vsyncmov [#allocation2 + $0x6] }
  0xf0   :  { %s750_s30 = vpop.sfrf %749 }
  0xf1   :  { %p919_p6 = scmp.ne.s32.totalorder %s750_s30, 0 }
  0xf3   :  { %754 = shalt.err (%p919_p6)  }
  0xf4   :  { %756 = vsyncmov [#allocation2 + $0x7] }
  0xf7   :  { %s757_s3 = vpop.sfrf %756 }
  0xf8   :  { %p920_p7 = scmp.ne.s32.totalorder %s757_s3, 0 }
  0xfa   :  { %761 = shalt.err (%p920_p7)  }
  0xfb   :  { %763 = vsyncmov [#allocation2 + $0x8] }
  0xfe   :  { %s764_s4 = vpop.sfrf %763 }
  0xff   :  { %p921_p8 = scmp.ne.s32.totalorder %s764_s4, 0 }
 0x101   :  { %768 = shalt.err (%p921_p8)  }
 0x102   :  { %770 = vsyncmov [#allocation2 + $0x9] }
 0x105   :  { %s771_s5 = vpop.sfrf %770 }
 0x106   :  { %p922_p9 = scmp.ne.s32.totalorder %s771_s5, 0 }
 0x108   :  { %775 = shalt.err (%p922_p9)  }
 0x109   :  { %777 = vsyncmov [#allocation2 + $0xa] }
 0x10c   :  { %s778_s6 = vpop.sfrf %777 }
 0x10d   :  { %p923_p10 = scmp.ne.s32.totalorder %s778_s6, 0 }
 0x10f   :  { %782 = shalt.err (%p923_p10)  }
 0x110   :  { %784 = vsyncmov [#allocation2 + $0xb] }
 0x113   :  { %s785_s7 = vpop.sfrf %784 }
 0x114   :  { %p924_p11 = scmp.ne.s32.totalorder %s785_s7, 0 }
 0x116   :  { %789 = shalt.err (%p924_p11)  }
 0x117   :  { %791 = vsyncmov [#allocation2 + $0xc] }
 0x11a   :  { %s792_s8 = vpop.sfrf %791 }
 0x11b   :  { %p925_p12 = scmp.ne.s32.totalorder %s792_s8, 0 }
 0x11d   :  { %796 = shalt.err (%p925_p12)  }
 0x11e   :  { %798 = vsyncmov [#allocation2 + $0xd] }
 0x121   :  { %s799_s9 = vpop.sfrf %798 }
 0x122   :  { %p926_p13 = scmp.ne.s32.totalorder %s799_s9, 0 }
 0x124   :  { %803 = shalt.err (%p926_p13)  }
 0x125   :  { %805 = vsyncmov [#allocation2 + $0xe] }
 0x128   :  { %s806_s10 = vpop.sfrf %805 }
 0x129   :  { %p927_p0 = scmp.ne.s32.totalorder %s806_s10, 0 }
 0x12b   :  { %810 = shalt.err (%p927_p0)  }
 0x12c   :  { %812 = vsyncmov [#allocation2 + $0xf] }
 0x12f   :  { %s813_s11 = vpop.sfrf %812 }
 0x130   :  { %p928_p1 = scmp.ne.s32.totalorder %s813_s11, 0 }
 0x132   :  { %817 = shalt.err (%p928_p1)  }

</bundles_post_ra>
